<compile_context>
chip_gen: v7x
topology: tpu7x:2x2x1
jax: 0.10.0
libtpu: 0.0.40
codegen_flags: <defaults>
</compile_context>

<pallas_src>
import functools

import jax
import jax.numpy as jnp
from jax.experimental import pallas as pl
from jax.experimental.pallas import tpu as pltpu


def _round_up(x, m):
    return (x + m - 1) // m * m


def _hnet_kernel(x_ref, w1_ref, b1_ref, w2_ref, b2_ref, w3_ref, b3_ref, out_ref):
    """fc1 -> relu -> fc2 -> relu -> fc3 on one packed batch tile, fused in VMEM.

    x_ref is (TR, 2*S) bf16 (two batch rows packed per row); weights are the
    block-diagonal packed bf16 matrices, biases are the tiled f32 biases.
    """
    x = x_ref[...]  # (TR, 2*S) bf16 — already bf16, no per-tile pack needed.
    # fc1 + ReLU  (bf16 MXU inputs, f32 accumulate, f32 VPU epilogue)
    h = jnp.dot(x, w1_ref[...], preferred_element_type=jnp.float32) + b1_ref[...]
    h = jnp.maximum(h, 0.0)
    # fc2 + ReLU  (K = N = 128 -> full MXU width on v5e, half-filled on v6e/v7x)
    h = jnp.dot(h.astype(jnp.bfloat16), w2_ref[...],
                preferred_element_type=jnp.float32) + b2_ref[...]
    h = jnp.maximum(h, 0.0)
    # fc3 (action values, no activation); packed output (TR, 2*action_size)
    out_ref[...] = (
        jnp.dot(h.astype(jnp.bfloat16), w3_ref[...],
                preferred_element_type=jnp.float32) + b3_ref[...]
    ).astype(out_ref.dtype)


def _vmem_limit_bytes(tr, in2, hid2, out2):
    """Conservative scoped-VMEM budget from the packed tile sizes, with headroom."""
    lane = 128
    # streamed bf16 input / f32 output tiles, double-buffered, lane-padded
    stream = 2 * tr * (_round_up(in2, lane) * 2 + _round_up(out2, lane) * 4)
    # bf16 packed weights (x2 in case Mosaic double-buffers them) + f32 biases
    weights = 2 * 2 * (in2 * hid2 + hid2 * hid2 + hid2 * out2)
    biases = 2 * 4 * (2 * hid2 + out2)
    # f32 + bf16 intermediate activation slabs
    acts = 6 * tr * _round_up(hid2, lane) * 4
    total = stream + weights + biases + acts
    # 2x headroom; cap at 48 MiB (<= v7x's 64 MiB/TC physical, leaves compiler scratch).
    return int(min(max(2 * total, 4 << 20), 48 << 20))


def pack_hnetwork_params(w1, b1, w2, b2, w3, b3):
    """One-time (out of hot path) prep: block-diagonal duplicate each weight
    ([[W,0],[0,W]]) so two batch rows can be processed per 128-lane vreg row,
    cast weights to bf16, and tile biases [b, b] (kept f32)."""

    def blockdiag2(w):
        fi, fo = w.shape
        z = jnp.zeros((fi, fo), w.dtype)
        top = jnp.concatenate([w, z], axis=1)
        bot = jnp.concatenate([z, w], axis=1)
        return jnp.concatenate([top, bot], axis=0)  # (2*fi, 2*fo)

    w1p = blockdiag2(w1).astype(jnp.bfloat16)       # (2S, 2H)
    w2p = blockdiag2(w2).astype(jnp.bfloat16)       # (2H, 2H)
    w3p = blockdiag2(w3).astype(jnp.bfloat16)       # (2H, 2A)
    b1p = jnp.concatenate([b1, b1], axis=-1)        # (1, 2H) f32
    b2p = jnp.concatenate([b2, b2], axis=-1)        # (1, 2H) f32
    b3p = jnp.concatenate([b3, b3], axis=-1)        # (1, 2A) f32
    return w1p, b1p, w2p, b2p, w3p, b3p


@functools.partial(jax.jit, static_argnames=("tile_b",))
def hnetwork_forward(state, w1p, b1p, w2p, b2p, w3p, b3p, *, tile_b=4096):
    """Forward pass. `state` is (B, state_size) f32; packed params come from
    pack_hnetwork_params(). tile_b = batch rows per grid step (rounded to x16)."""
    B, state_size = state.shape
    in2 = w1p.shape[0]           # 2 * state_size
    hid2 = w1p.shape[1]          # 2 * hidden
    out2 = w3p.shape[1]          # 2 * action_size
    action_size = out2 // 2
    assert in2 == 2 * state_size, "packed params don't match state_size"

    # ---- batch tiling over packed rows (2 batch rows per packed row) ----
    rows = -(-B // 2)                                 # packed rows needed
    rows8 = _round_up(rows, 8)
    max_tr = max(8, (max(tile_b, 16) // 2) // 8 * 8)  # cap, multiple of 8
    if rows8 > max_tr:
        tr = max_tr                                   # already >= 2 grid steps
    elif rows8 >= 16:
        # split a single-tile batch into >= 2 steps so both v7x TCs get work
        tr = min(max_tr, _round_up(-(-rows8 // 2), 8))
    else:
        tr = rows8                                    # tiny batch: one step
    Rp = (-(-rows // tr)) * tr                        # padded packed rows
    Bpad = 2 * Rp

    x = state if Bpad == B else jnp.pad(state, ((0, Bpad - B), (0, 0)))
    # pack two batch rows per lane row and stream bf16 into the kernel
    xp = x.reshape(Rp, in2).astype(jnp.bfloat16)

    grid = (Rp // tr,)

    def const_spec(shape):
        # Full-array block, constant index_map -> DMA'd once, VMEM-resident
        # across all grid steps.
        return pl.BlockSpec(shape, lambda i: (0, 0))

    out = pl.pallas_call(
        _hnet_kernel,
        out_shape=jax.ShapeDtypeStruct((Rp, out2), jnp.float32),
        grid_spec=pltpu.PrefetchScalarGridSpec(
            num_scalar_prefetch=0,
            grid=grid,
            in_specs=[
                pl.BlockSpec((tr, in2), lambda i: (i, 0)),  # streamed packed state (bf16)
                const_spec((in2, hid2)),                    # W1 packed (bf16)
                const_spec((1, hid2)),                      # b1 packed (f32)
                const_spec((hid2, hid2)),                   # W2 packed (bf16)
                const_spec((1, hid2)),                      # b2 packed (f32)
                const_spec((hid2, out2)),                   # W3 packed (bf16)
                const_spec((1, out2)),                      # b3 packed (f32)
            ],
            out_specs=pl.BlockSpec((tr, out2), lambda i: (i, 0)),
        ),
        compiler_params=pltpu.CompilerParams(
            # Batch grid axis is embarrassingly parallel -> v7x megacore sharding.
            dimension_semantics=("parallel",),
            vmem_limit_bytes=_vmem_limit_bytes(tr, in2, hid2, out2),
        ),
    )(xp, w1p, b1p, w2p, b2p, w3p, b3p)

    # un-pack: (Rp, 2A) -> (Bpad, A), then drop padded rows
    out = out.reshape(Bpad, action_size)
    return out if Bpad == B else out[:B]


def init_hnetwork_params(key, state_size, action_size, hidden_size=64):
    """Deterministic init mimicking PyTorch nn.Linear default:
    U(-1/sqrt(fan_in), 1/sqrt(fan_in)) for both weight and bias.
    Weights stored as (in_features, out_features) so y = x @ W + b."""
    keys = jax.random.split(key, 6)

    def linear(kw, kb, fan_in, fan_out):
        bound = 1.0 / jnp.sqrt(jnp.float32(fan_in))
        w = jax.random.uniform(kw, (fan_in, fan_out), jnp.float32, -bound, bound)
        b = jax.random.uniform(kb, (1, fan_out), jnp.float32, -bound, bound)
        return w, b

    w1, b1 = linear(keys[0], keys[1], state_size, hidden_size)
    w2, b2 = linear(keys[2], keys[3], hidden_size, hidden_size)
    w3, b3 = linear(keys[4], keys[5], hidden_size, action_size)
    return w1, b1, w2, b2, w3, b3


def hnetwork_reference(state, w1, b1, w2, b2, w3, b3):
    """Pure-JAX f32 reference for correctness check."""
    h = jnp.maximum(state @ w1 + b1, 0.0)
    h = jnp.maximum(h @ w2 + b2, 0.0)
    return h @ w3 + b3


if __name__ == "__main__":
    key = jax.random.PRNGKey(0)
    k_state, k_params = jax.random.split(key)

    # Small shapes consistent with the module: batch=8, state_size=16,
    # hidden_size=64, action_size=4.
    B, state_size, action_size, hidden_size = 8, 16, 4, 64

    state = jax.random.normal(k_state, (B, state_size), jnp.float32)
    params = init_hnetwork_params(k_params, state_size, action_size, hidden_size)
    packed = pack_hnetwork_params(*params)   # one-time, out of the hot path

    out = jax.block_until_ready(hnetwork_forward(state, *packed))
    ref = hnetwork_reference(state, *params)
    assert out.shape == (B, action_size)
    # bf16 MXU inputs with f32 accumulation vs pure-f32 reference -> loosened tol.
    assert jnp.allclose(out, ref, atol=2e-2, rtol=2e-2), (
        float(jnp.max(jnp.abs(out - ref)))
    )

    # Also exercise the batch-tiled / padded / multi-step-grid path with a
    # larger, non-aligned B.
    B2 = 1000
    state2 = jax.random.normal(jax.random.PRNGKey(1), (B2, state_size), jnp.float32)
    out2 = jax.block_until_ready(hnetwork_forward(state2, *packed, tile_b=512))
    ref2 = hnetwork_reference(state2, *params)
    assert out2.shape == (B2, action_size)
    assert jnp.allclose(out2, ref2, atol=2e-2, rtol=2e-2)

    print("KERNEL_OK")
</pallas_src>

<mosaic_0001>
module attributes {stable_mosaic.version = 11 : i64} {
  func.func @_hnet_kernel(%arg0: i32, %arg1: memref<8x32xbf16, #tpu.memory_space<vmem>>, %arg2: memref<32x128xbf16, #tpu.memory_space<vmem>>, %arg3: memref<1x128xf32, #tpu.memory_space<vmem>>, %arg4: memref<128x128xbf16, #tpu.memory_space<vmem>>, %arg5: memref<1x128xf32, #tpu.memory_space<vmem>>, %arg6: memref<128x8xbf16, #tpu.memory_space<vmem>>, %arg7: memref<1x8xf32, #tpu.memory_space<vmem>>, %arg8: memref<8x8xf32, #tpu.memory_space<vmem>>) attributes {dimension_semantics = [#tpu.dimension_semantics<parallel>], iteration_bounds = array<i64: 1>, scalar_prefetch = 0 : i64, scratch_operands = 0 : i64, tpu.core_type = #tpu.core_type<tc>, window_params = [{transform_indices = @transform_0, window_bounds = array<i64: 8, 32>}, {pipeline_mode = #tpu.pipeline_mode<synchronous>, transform_indices = @transform_1, window_bounds = array<i64: 32, 128>}, {pipeline_mode = #tpu.pipeline_mode<synchronous>, transform_indices = @transform_2, window_bounds = array<i64: 1, 128>}, {pipeline_mode = #tpu.pipeline_mode<synchronous>, transform_indices = @transform_3, window_bounds = array<i64: 128, 128>}, {pipeline_mode = #tpu.pipeline_mode<synchronous>, transform_indices = @transform_4, window_bounds = array<i64: 1, 128>}, {pipeline_mode = #tpu.pipeline_mode<synchronous>, transform_indices = @transform_5, window_bounds = array<i64: 128, 8>}, {pipeline_mode = #tpu.pipeline_mode<synchronous>, transform_indices = @transform_6, window_bounds = array<i64: 1, 8>}, {transform_indices = @transform_7, window_bounds = array<i64: 8, 8>}]} {
    %c0 = arith.constant 0 : index
    %c0_0 = arith.constant 0 : index
    %0 = vector.load %arg1[%c0, %c0_0] : memref<8x32xbf16, #tpu.memory_space<vmem>>, vector<8x32xbf16>
    %c0_1 = arith.constant 0 : index
    %c0_2 = arith.constant 0 : index
    %1 = vector.load %arg2[%c0_1, %c0_2] : memref<32x128xbf16, #tpu.memory_space<vmem>>, vector<32x128xbf16>
    %cst = arith.constant dense<0.000000e+00> : vector<8x128xf32>
    %2 = tpu.matmul %0, %1, %cst {dimension_numbers = #tpu.dot_dimension_numbers<[1], [0], [0], [1], [0, 0, 1, 1], [], []>} : vector<8x32xbf16>, vector<32x128xbf16>, vector<8x128xf32> -> vector<8x128xf32>
    %c0_3 = arith.constant 0 : index
    %c0_4 = arith.constant 0 : index
    %3 = vector.load %arg3[%c0_3, %c0_4] : memref<1x128xf32, #tpu.memory_space<vmem>>, vector<1x128xf32>
    %4 = vector.broadcast %3 : vector<1x128xf32> to vector<8x128xf32>
    %5 = arith.addf %2, %4 : vector<8x128xf32>
    %cst_5 = arith.constant 0.000000e+00 : f32
    %6 = vector.broadcast %cst_5 : f32 to vector<8x128xf32>
    %7 = arith.maximumf %5, %6 : vector<8x128xf32>
    %8 = arith.truncf %7 : vector<8x128xf32> to vector<8x128xbf16>
    %c0_6 = arith.constant 0 : index
    %c0_7 = arith.constant 0 : index
    %9 = vector.load %arg4[%c0_6, %c0_7] : memref<128x128xbf16, #tpu.memory_space<vmem>>, vector<128x128xbf16>
    %cst_8 = arith.constant dense<0.000000e+00> : vector<8x128xf32>
    %10 = tpu.matmul %8, %9, %cst_8 {dimension_numbers = #tpu.dot_dimension_numbers<[1], [0], [0], [1], [0, 0, 1, 1], [], []>} : vector<8x128xbf16>, vector<128x128xbf16>, vector<8x128xf32> -> vector<8x128xf32>
    %c0_9 = arith.constant 0 : index
    %c0_10 = arith.constant 0 : index
    %11 = vector.load %arg5[%c0_9, %c0_10] : memref<1x128xf32, #tpu.memory_space<vmem>>, vector<1x128xf32>
    %12 = vector.broadcast %11 : vector<1x128xf32> to vector<8x128xf32>
    %13 = arith.addf %10, %12 : vector<8x128xf32>
    %cst_11 = arith.constant 0.000000e+00 : f32
    %14 = vector.broadcast %cst_11 : f32 to vector<8x128xf32>
    %15 = arith.maximumf %13, %14 : vector<8x128xf32>
    %16 = arith.truncf %15 : vector<8x128xf32> to vector<8x128xbf16>
    %c0_12 = arith.constant 0 : index
    %c0_13 = arith.constant 0 : index
    %17 = vector.load %arg6[%c0_12, %c0_13] : memref<128x8xbf16, #tpu.memory_space<vmem>>, vector<128x8xbf16>
    %cst_14 = arith.constant dense<0.000000e+00> : vector<8x8xf32>
    %18 = tpu.matmul %16, %17, %cst_14 {dimension_numbers = #tpu.dot_dimension_numbers<[1], [0], [0], [1], [0, 0, 1, 1], [], []>} : vector<8x128xbf16>, vector<128x8xbf16>, vector<8x8xf32> -> vector<8x8xf32>
    %c0_15 = arith.constant 0 : index
    %c0_16 = arith.constant 0 : index
    %19 = vector.load %arg7[%c0_15, %c0_16] : memref<1x8xf32, #tpu.memory_space<vmem>>, vector<1x8xf32>
    %20 = vector.broadcast %19 : vector<1x8xf32> to vector<8x8xf32>
    %21 = arith.addf %18, %20 : vector<8x8xf32>
    %c0_17 = arith.constant 0 : index
    %c0_18 = arith.constant 0 : index
    %22 = vector.load %arg8[%c0_17, %c0_18] : memref<8x8xf32, #tpu.memory_space<vmem>>, vector<8x8xf32>
    tpu.vector_store %arg8[%c0_17, %c0_18], %21 {strides = array<i32>} : memref<8x8xf32, #tpu.memory_space<vmem>>, vector<8x8xf32>,
    return
  }
  func.func @transform_0(%arg0: i32) -> (i32, i32) {
    %c0_i32 = arith.constant 0 : i32
    %c0_i32_0 = arith.constant 0 : i32
    return %arg0, %c0_i32 : i32, i32
  }
  func.func @transform_1(%arg0: i32) -> (i32, i32) {
    %c0_i32 = arith.constant 0 : i32
    %c0_i32_0 = arith.constant 0 : i32
    %c0_i32_1 = arith.constant 0 : i32
    return %c0_i32, %c0_i32_0 : i32, i32
  }
  func.func @transform_2(%arg0: i32) -> (i32, i32) {
    %c0_i32 = arith.constant 0 : i32
    %c0_i32_0 = arith.constant 0 : i32
    %c0_i32_1 = arith.constant 0 : i32
    return %c0_i32, %c0_i32_0 : i32, i32
  }
  func.func @transform_3(%arg0: i32) -> (i32, i32) {
    %c0_i32 = arith.constant 0 : i32
    %c0_i32_0 = arith.constant 0 : i32
    %c0_i32_1 = arith.constant 0 : i32
    return %c0_i32, %c0_i32_0 : i32, i32
  }
  func.func @transform_4(%arg0: i32) -> (i32, i32) {
    %c0_i32 = arith.constant 0 : i32
    %c0_i32_0 = arith.constant 0 : i32
    %c0_i32_1 = arith.constant 0 : i32
    return %c0_i32, %c0_i32_0 : i32, i32
  }
  func.func @transform_5(%arg0: i32) -> (i32, i32) {
    %c0_i32 = arith.constant 0 : i32
    %c0_i32_0 = arith.constant 0 : i32
    %c0_i32_1 = arith.constant 0 : i32
    return %c0_i32, %c0_i32_0 : i32, i32
  }
  func.func @transform_6(%arg0: i32) -> (i32, i32) {
    %c0_i32 = arith.constant 0 : i32
    %c0_i32_0 = arith.constant 0 : i32
    %c0_i32_1 = arith.constant 0 : i32
    return %c0_i32, %c0_i32_0 : i32, i32
  }
  func.func @transform_7(%arg0: i32) -> (i32, i32) {
    %c0_i32 = arith.constant 0 : i32
    %c0_i32_0 = arith.constant 0 : i32
    return %arg0, %c0_i32 : i32, i32
  }
}

</mosaic_0001>

<bundles_post_ra>
// kernel: hnetwork_forward.1
= control target key start
LH: loop header
LB: loop body
LE: loop exit
PB: predicated region body
PF: predicated region fallthrough
CT: control target
= control target key end

     0   :  { %v438_v0 = vmov 0.0   ;;  %vm439_vm0 = vmmov 0   ;;  %vm51_vm1 = vcmask 261120   ;;  %vm321_vm2 = vcmask 64512   ;;  %s573_s1 = inlined_call_operand.vmem [shape: bf16[32,128], index: 1, kind: input, shape index: {}]   ;;  %s574_s3 = inlined_call_operand.vmem [shape: bf16[128,128], index: 3, kind: input, shape index: {}]   ;;  %s575_s0 = inlined_call_operand.vmem [shape: bf16[8,32], index: 0, kind: input, shape index: {}]   ;;  %s576_s5 = inlined_call_operand.vmem [shape: bf16[128,8], index: 5, kind: input, shape index: {}]   ;;  %s577_s2 = inlined_call_operand.vmem [shape: f32[1,128], index: 2, kind: input, shape index: {}]   ;;  %s578_s4 = inlined_call_operand.vmem [shape: f32[1,128], index: 4, kind: input, shape index: {}]   ;;  %s579_s6 = inlined_call_operand.vmem [shape: f32[1,8], index: 6, kind: input, shape index: {}]   ;;  %s580_s7 = inlined_call_operand.vmem [shape: f32[8,8], index: 7, kind: output, shape index: {}]  }
   0x1   :  { %370 = vmatprep.subr.bf16.mxu0 %v438_v0  ;;  %v420_v1 = vld [vmem:[%s573_s1] sm:$0xff]   ;;  %374 = vmatprep.mubr.msk.bf16.mxu0 %vm439_vm0, %v438_v0  ;;  %v421_v2 = vld [vmem:[%s573_s1 + $0x8] sm:$0xff]   ;;  %v424_v6 = vld [vmem:[%s574_s3 + $0x10] sm:$0xff]  }
   0x2   :  { %378 = vmatprep.subr.bf16.mxu1 %v438_v0  ;;  %394 = vmatprep.mubr.msk.bf16.mxu1 %vm439_vm0, %v438_v0  ;;  %v422_v3 = vld [vmem:[%s574_s3] sm:$0xff]   ;;  %v423_v4 = vld [vmem:[%s574_s3 + $0x8] sm:$0xff]   ;;  %v425_v7 = vld [vmem:[%s574_s3 + $0x18] sm:$0xff]  }
   0x3   :  { %371 = vmatpush3.bf16.msra.mxu0 %v420_v1  ;;  %379 = vmatpush3.bf16.msra.mxu1 %v422_v3  ;;  %v27_v5 = vld [vmem:[%s575_s0] sm:$0xf]  ;;  %v427_v9 = vld [vmem:[%s574_s3 + $0x28] sm:$0xff]   ;;  %v428_v10 = vld [vmem:[%s574_s3 + $0x30] sm:$0xff]  }
   0x4   :  { %372 = vmatprep.subr.bf16.mxu0 %v438_v0  ;;  %380 = vmatprep.subr.bf16.mxu1 %v438_v0  ;;  %v426_v8 = vld [vmem:[%s574_s3 + $0x20] sm:$0xff]   ;;  %v429_v11 = vld [vmem:[%s574_s3 + $0x38] sm:$0xff]   ;;  %v431_v13 = vld [vmem:[%s576_s5 + $0x8] sm:$0xff]  }
   0x5   :  { %v430_v12 = vld [vmem:[%s576_s5] sm:$0xff]   ;;  %v432_v14 = vld [vmem:[%s576_s5 + $0x10] sm:$0xff]   ;;  %v433_v15 = vld [vmem:[%s576_s5 + $0x18] sm:$0xff]  }
   0x6   :  { %v434_v16 = vld [vmem:[%s576_s5 + $0x20] sm:$0xff]   ;;  %v435_v17 = vld [vmem:[%s576_s5 + $0x28] sm:$0xff]   ;;  %v436_v26 = vld [vmem:[%s576_s5 + $0x30] sm:$0xff]  }
   0x7   :  { %373 = vmatpush3.bf16.msra.mxu0 %v421_v2  ;;  %381 = vmatpush3.bf16.msra.mxu1 %v423_v4  ;;  %v327_v18 = vld [vmem:[%s577_s2] ss:$0 sm:$0xff]  ;;  %v437_v27 = vld [vmem:[%s576_s5 + $0x38] sm:$0xff]  }
   0x8   :  { %398 = vmatprep.subr.bf16.mxu0 %v438_v0  ;;  %382 = vmatprep.subr.bf16.mxu1 %v438_v0  ;;  %v331_v28 = vld [vmem:[%s578_s4] ss:$0 sm:$0xff] }
   0x9   :  { %v340_v36 = vld [vmem:[%s579_s6] ss:$0 sm:$0xff] }
   0xa   :  { %375 = vmatmul.mubr.msk.bf16.vlgmr.msra.gmra.mrb[0].mxu0 %vm51_vm1, %v27_v5 }
   0xb   :  { %414 = vmatprep.mubr.msk.bf16.mxu0 %vm439_vm0, %v438_v0  ;;  %383 = vmatpush3.bf16.msra.mxu1 %v424_v6 }
   0xc   :  { %384 = vmatprep.subr.bf16.mxu1 %v438_v0  ;;  %399 = vmatpush3.bf16.msra.mxu0 %v430_v12 }
   0xd   :  { %400 = vmatprep.subr.bf16.mxu0 %v438_v0 }
   0xf   :  { %385 = vmatpush3.bf16.msra.mxu1 %v425_v7 }
  0x10   :  { %386 = vmatprep.subr.bf16.mxu1 %v438_v0  ;;  %401 = vmatpush3.bf16.msra.mxu0 %v431_v13 }
  0x11   :  { %402 = vmatprep.subr.bf16.mxu0 %v438_v0 }
  0x13   :  { %387 = vmatpush3.bf16.msra.mxu1 %v426_v8 }
  0x14   :  { %388 = vmatprep.subr.bf16.mxu1 %v438_v0  ;;  %403 = vmatpush3.bf16.msra.mxu0 %v432_v14 }
  0x15   :  { %404 = vmatprep.subr.bf16.mxu0 %v438_v0 }
  0x17   :  { %389 = vmatpush3.bf16.msra.mxu1 %v427_v9 }
  0x18   :  { %390 = vmatprep.subr.bf16.mxu1 %v438_v0  ;;  %405 = vmatpush3.bf16.msra.mxu0 %v433_v15 }
  0x19   :  { %406 = vmatprep.subr.bf16.mxu0 %v438_v0 }
  0x1b   :  { %391 = vmatpush3.bf16.msra.mxu1 %v428_v10 }
  0x1c   :  { %392 = vmatprep.subr.bf16.mxu1 %v438_v0  ;;  %407 = vmatpush3.bf16.msra.mxu0 %v434_v16 }
  0x1d   :  { %408 = vmatprep.subr.bf16.mxu0 %v438_v0 }
  0x1f   :  { %393 = vmatpush3.bf16.msra.mxu1 %v429_v11 }
  0x20   :  { %409 = vmatpush3.bf16.msra.mxu0 %v435_v17 }
  0x21   :  { %410 = vmatprep.subr.bf16.mxu0 %v438_v0 }
  0x24   :  { %411 = vmatpush3.bf16.msra.mxu0 %v436_v26 }
  0x25   :  { %412 = vmatprep.subr.bf16.mxu0 %v438_v0 }
  0x28   :  { %413 = vmatpush3.bf16.msra.mxu0 %v437_v27 }
  0xdd   :  { %v89_v19 = vpop.f32.mrb[0].mxu0 }
  0xde   :  { %v90_v20 = vadd.f32 %v327_v18, %v89_v19  ;;  %v376_v21 = vpop.f32.mrb[1].mxu0 }
  0xdf   :  { %v92_v22 = vpop.f32.mrb[2].mxu0 }
  0xe0   :  { %v95_v23 = vmax.f32 %v90_v20, 0.0  ;;  %v377_v24 = vpop.f32.mrb[3].mxu0 }
  0xe2   :  { %v96_v25 = vpack.c.bf16 %v95_v23, %v95_v23 }
  0xe4   :  { %395 = vmatmul.mubr.bf16.vlgmr.msra.gmra.mrb[0].mxu1 %v96_v25 }
 0x1b7   :  { %v202_v29 = vpop.f32.mrb[0].mxu1 }
 0x1b8   :  { %v203_v30 = vadd.f32 %v331_v28, %v202_v29  ;;  %v396_v31 = vpop.f32.mrb[1].mxu1 }
 0x1b9   :  { %v205_v32 = vpop.f32.mrb[2].mxu1 }
 0x1ba   :  { %v208_v33 = vmax.f32 %v203_v30, 0.0  ;;  %v397_v34 = vpop.f32.mrb[3].mxu1 }
 0x1bc   :  { %v209_v35 = vpack.c.bf16 %v208_v33, %v208_v33 }
 0x1be   :  { %415 = vmatmul.mubr.bf16.vlgmr.msra.gmra.mrb[4].mxu0 %v209_v35 }
 0x291   :  { %v315_v37 = vpop.f32.mrb[4].mxu0 }
 0x292   :  { %v316_v38 = vadd.f32 %v340_v36, %v315_v37  ;;  %v416_v39 = vpop.f32.mrb[5].mxu0 }
 0x293   :  { %v318_v40 = vpop.f32.mrb[6].mxu0 }
 0x294   :  { %322 = vst.msk [vmem:[%s580_s7] sm:$0xff] %vm321_vm2, %v316_v38  ;;  %v417_v41 = vpop.f32.mrb[7].mxu0 }

</bundles_post_ra>
